<compile_context>
chip_gen: v7x
topology: tpu7x:2x2x1
jax: 0.10.0
libtpu: 0.0.40
codegen_flags: <defaults>
</compile_context>

<pallas_src>
import functools
import math

import jax
import jax.numpy as jnp
from jax.experimental import pallas as pl
from jax.experimental.pallas import tpu as pltpu


# ----------------------------------------------------------------------------
# Kernel
# ----------------------------------------------------------------------------
def _embed_kernel(ids_ref,                  # SMEM scalar-prefetch: flat (B*S_pad,) ids
                  wtab_ref,                 # word table: VMEM block (resident) or HBM (pl.ANY)
                  pos_ref,                  # (TQ, E) pipelined position tile (VMEM)
                  *refs,                    # [ln_w?], [proj?], out, wbuf, [sem]
                  eps, use_ln, use_proj, tq, s_pad, resident, unroll):
    idx = 0
    ln_w_ref = None
    proj_ref = None
    if use_ln:
        ln_w_ref = refs[idx]; idx += 1
    if use_proj:
        proj_ref = refs[idx]; idx += 1
    out_ref = refs[idx]; idx += 1
    wbuf = refs[idx]; idx += 1
    sem = None if resident else refs[idx]

    b = pl.program_id(0)
    j = pl.program_id(1)
    base = b * s_pad + j * tq            # flat offset of this tile's first token

    if resident:
        # Whole word table is VMEM-resident: gather rows with dynamic indexing.
        def gather(i, carry):
            wid = ids_ref[base + i]
            wbuf[pl.ds(i, 1)] = wtab_ref[pl.ds(wid, 1)]
            return carry
        jax.lax.fori_loop(0, tq, gather, 0, unroll=unroll)
    else:
        # Word table in HBM: issue all TQ row DMAs on one semaphore (they
        # overlap each other), then wait ONCE for TQ*E*itemsize bytes.
        def issue(i, carry):
            wid = ids_ref[base + i]
            pltpu.make_async_copy(wtab_ref.at[pl.ds(wid, 1)],
                                  wbuf.at[pl.ds(i, 1)],
                                  sem.at[0]).start()
            return carry
        jax.lax.fori_loop(0, tq, issue, 0, unroll=unroll)
        # Aggregate wait: DMA semaphores count bytes, so one (TQ, E)-sized
        # descriptor covers all TQ single-row copies issued above.
        pltpu.make_async_copy(wbuf, wbuf, sem.at[0]).wait()

    # (TQ, E) tile: word + position embeddings, f32 accumulation.
    x = wbuf[...].astype(jnp.float32) + pos_ref[...].astype(jnp.float32)

    if use_ln:
        # One-pass statistics: mean and mean-of-squares together.
        mean = jnp.mean(x, axis=-1, keepdims=True)
        var = jnp.mean(x * x, axis=-1, keepdims=True) - mean * mean
        x = (x - mean) * jax.lax.rsqrt(var + eps)
        x = x * ln_w_ref[...].astype(jnp.float32)        # affine, no bias

    if use_proj:
        w = proj_ref[...]
        # MXU matmul in the weight's dtype (bf16 weights hit the bf16 path).
        x = jnp.dot(x.astype(w.dtype), w, preferred_element_type=jnp.float32)

    # Dropout(p=0.0) -> identity.
    out_ref[...] = x.astype(out_ref.dtype)


# ----------------------------------------------------------------------------
# Wrapper
# ----------------------------------------------------------------------------
def embed_forward(input_ids, word_emb, pos_emb, ln_weight=None, proj_weight=None,
                  *, layer_norm_embeddings=False, use_embeddings_project=False,
                  layer_norm_eps=1e-5, token_tile=128, out_dtype=None,
                  table_vmem_budget=8 * 1024 * 1024):
    """Pallas implementation of Embed.forward.

    input_ids:    (B, S) int32
    word_emb:     (V, E) float32/bf16
    pos_emb:      (P, E) float32/bf16, P >= S
    ln_weight:    (E,)   (required iff layer_norm_embeddings)
    proj_weight:  (E, H) (required iff use_embeddings_project)
    out_dtype:    output dtype (default f32; pass bf16 to halve write-back)
    returns:      (B, S, H), H = proj_weight.shape[1] if projecting else E.

    Notes: for best store throughput H should be a multiple of 128 (lane-dense
    unmasked vst); tables whose byte size <= table_vmem_budget use the
    VMEM-resident gather path (no per-row DMAs).
    """
    B, S = input_ids.shape
    V, E = word_emb.shape
    P = pos_emb.shape[0]
    if layer_norm_embeddings:
        assert ln_weight is not None
    if use_embeddings_project:
        assert proj_weight is not None
    H = proj_weight.shape[1] if use_embeddings_project else E
    out_dtype = jnp.float32 if out_dtype is None else out_dtype

    # Token tile: multiple of 8 sublanes, capped at token_tile and at S.
    tq = int(min(token_tile, -(-S // 8) * 8))
    tq = max(8, (tq // 8) * 8)
    n_s = -(-S // tq)
    s_pad = n_s * tq

    # Flat 1-D ids in SMEM (1-D avoids the 2-D SMEM padding blowup).
    ids = input_ids.astype(jnp.int32)
    if s_pad > S:
        ids = jnp.pad(ids, ((0, 0), (0, s_pad - S)))     # pad ids -> row 0
    ids_flat = ids.reshape(-1)

    # Pad the position table so tile reads stay in bounds / divide evenly.
    p_pad = max(s_pad, -(-P // tq) * tq)
    pos = pos_emb if p_pad == P else jnp.pad(pos_emb, ((0, p_pad - P), (0, 0)))

    itemsize_w = jnp.dtype(word_emb.dtype).itemsize
    resident = (V * E * itemsize_w) <= table_vmem_budget

    # --- specs / args (never ship dummy weights) ---
    in_specs = []
    if resident:
        in_specs.append(pl.BlockSpec((V, E), lambda b, j, ids: (0, 0)))   # whole table in VMEM
    else:
        in_specs.append(pl.BlockSpec(memory_space=pl.ANY))                # table stays in HBM
    in_specs.append(pl.BlockSpec((tq, E), lambda b, j, ids: (j, 0)))      # pipelined pos tile
    args = [word_emb, pos]
    if layer_norm_embeddings:
        in_specs.append(pl.BlockSpec((1, E), lambda b, j, ids: (0, 0)))
        args.append(ln_weight.reshape(1, E))
    if use_embeddings_project:
        in_specs.append(pl.BlockSpec((E, H), lambda b, j, ids: (0, 0)))
        args.append(proj_weight)

    scratch = [pltpu.VMEM((tq, E), word_emb.dtype)]       # gathered word rows
    if not resident:
        scratch.append(pltpu.SemaphoreType.DMA((1,)))

    kernel = functools.partial(
        _embed_kernel,
        eps=layer_norm_eps,
        use_ln=layer_norm_embeddings,
        use_proj=use_embeddings_project,
        tq=tq, s_pad=s_pad, resident=resident,
        unroll=min(tq, 8),
    )

    grid_spec = pltpu.PrefetchScalarGridSpec(
        num_scalar_prefetch=1,                   # flat ids -> SMEM
        grid=(B, n_s),
        in_specs=in_specs,
        out_specs=pl.BlockSpec((None, tq, H), lambda b, j, ids: (b, j, 0)),
        scratch_shapes=scratch,
    )

    # Rough VMEM footprint; raise the scoped limit only when needed.
    est = 0
    est += (2 * V * E * itemsize_w) if resident else 0
    est += 2 * tq * E * jnp.dtype(pos.dtype).itemsize
    est += tq * E * itemsize_w
    est += 2 * tq * H * jnp.dtype(out_dtype).itemsize
    if layer_norm_embeddings:
        est += 2 * E * jnp.dtype(ln_weight.dtype).itemsize
    if use_embeddings_project:
        est += 2 * E * H * jnp.dtype(proj_weight.dtype).itemsize
    vmem_limit = None
    if est > 28 * 1024 * 1024:
        vmem_limit = int(min(est * 3 // 2 + (4 << 20), 128 << 20))

    out = pl.pallas_call(
        kernel,
        out_shape=jax.ShapeDtypeStruct((B, s_pad, H), out_dtype),
        grid_spec=grid_spec,
        compiler_params=pltpu.CompilerParams(
            dimension_semantics=("parallel", "parallel"),
            vmem_limit_bytes=vmem_limit),
    )(ids_flat, *args)

    return out[:, :S, :] if s_pad > S else out


# ----------------------------------------------------------------------------
# Pure-JAX reference (mirrors the PyTorch forward)
# ----------------------------------------------------------------------------
def embed_reference(input_ids, word_emb, pos_emb, ln_weight, proj_weight,
                    *, layer_norm_embeddings, use_embeddings_project,
                    layer_norm_eps=1e-5):
    B, S = input_ids.shape
    we = word_emb[input_ids]                         # (B, S, E)
    pe = pos_emb[jnp.arange(S)][None, :, :]          # (1, S, E)
    x = we + pe
    if layer_norm_embeddings:
        mean = jnp.mean(x, axis=-1, keepdims=True)
        var = jnp.mean(jnp.square(x - mean), axis=-1, keepdims=True)
        x = (x - mean) * jax.lax.rsqrt(var + layer_norm_eps)
        x = x * ln_weight
    if use_embeddings_project:
        x = x @ proj_weight
    return x                                          # dropout(p=0) = identity


# ----------------------------------------------------------------------------
# Main
# ----------------------------------------------------------------------------
if __name__ == "__main__":
    vocab_size = 100
    embedding_size = 32
    hidden_size = 64
    max_position_embeddings = 512
    B, S = 2, 8

    key = jax.random.PRNGKey(0)
    k_ids, k_we, k_pe, k_proj = jax.random.split(key, 4)

    input_ids = jax.random.randint(k_ids, (B, S), 0, vocab_size, dtype=jnp.int32)
    word_emb = jax.random.normal(k_we, (vocab_size, embedding_size), jnp.float32) * 0.02
    pos_emb = jax.random.normal(k_pe, (max_position_embeddings, embedding_size),
                                jnp.float32) * 0.02
    ln_weight = jnp.ones((embedding_size,), jnp.float32)          # LayerNorm init
    # nn.Linear(embedding_size, hidden_size, bias=False): y = x @ W, W: (E, H)
    proj_weight = (jax.random.uniform(k_proj, (embedding_size, hidden_size),
                                      jnp.float32, -1.0, 1.0)
                   / math.sqrt(embedding_size))

    ok = True
    for use_ln, use_proj in [(False, False), (True, False), (True, True)]:
        ref = embed_reference(
            input_ids, word_emb, pos_emb, ln_weight, proj_weight,
            layer_norm_embeddings=use_ln, use_embeddings_project=use_proj)
        # Exercise both gather paths: VMEM-resident fast path and HBM row-DMA path.
        for budget in (8 * 1024 * 1024, 0):
            out = embed_forward(
                input_ids, word_emb, pos_emb,
                ln_weight if use_ln else None,
                proj_weight if use_proj else None,
                layer_norm_embeddings=use_ln, use_embeddings_project=use_proj,
                table_vmem_budget=budget)
            out = jax.block_until_ready(out)
            if not jnp.allclose(out, ref, atol=1e-5, rtol=1e-5):
                ok = False

    if ok:
        print("KERNEL_OK")
</pallas_src>

<mosaic_0001>
module attributes {stable_mosaic.version = 11 : i64} {
  func.func @_embed_kernel(%arg0: i32, %arg1: i32, %arg2: memref<16xi32, #tpu.memory_space<smem>>, %arg3: memref<100x32xf32, #tpu.memory_space<vmem>>, %arg4: memref<8x32xf32, #tpu.memory_space<vmem>>, %arg5: memref<1x8x32xf32, #tpu.memory_space<vmem>>, %arg6: memref<8x32xf32, #tpu.memory_space<vmem>>) attributes {dimension_semantics = [#tpu.dimension_semantics<parallel>, #tpu.dimension_semantics<parallel>], iteration_bounds = array<i64: 2, 1>, scalar_prefetch = 1 : i64, scratch_operands = 1 : i64, tpu.core_type = #tpu.core_type<tc>, window_params = [{pipeline_mode = #tpu.pipeline_mode<synchronous>, transform_indices = @transform_0, window_bounds = array<i64: 100, 32>}, {transform_indices = @transform_1, window_bounds = array<i64: 8, 32>}, {transform_indices = @transform_2, window_bounds = array<i64: 1, 8, 32>}]} {
    %c8_i32 = arith.constant 8 : i32
    %0 = arith.muli %arg0, %c8_i32 : i32
    %c8_i32_0 = arith.constant 8 : i32
    %1 = arith.muli %arg1, %c8_i32_0 : i32
    %2 = arith.addi %0, %1 : i32
    %c0_i32 = arith.constant 0 : i32
    %3 = arith.addi %2, %c0_i32 : i32
    %4 = arith.index_cast %3 : i32 to index
    %5 = memref.load %arg2[%4] : memref<16xi32, #tpu.memory_space<smem>>
    %6 = arith.index_cast %5 : i32 to index
    %c0 = arith.constant 0 : index
    %7 = vector.load %arg3[%6, %c0] : memref<100x32xf32, #tpu.memory_space<vmem>>, vector<1x32xf32>
    %8 = arith.index_cast %c0_i32 : i32 to index
    %c0_1 = arith.constant 0 : index
    %9 = vector.load %arg6[%8, %c0_1] : memref<8x32xf32, #tpu.memory_space<vmem>>, vector<1x32xf32>
    tpu.vector_store %arg6[%8, %c0_1], %7 {strides = array<i32>} : memref<8x32xf32, #tpu.memory_space<vmem>>, vector<1x32xf32>,
    %c1_i32 = arith.constant 1 : i32
    %10 = arith.addi %2, %c1_i32 : i32
    %11 = arith.index_cast %10 : i32 to index
    %12 = memref.load %arg2[%11] : memref<16xi32, #tpu.memory_space<smem>>
    %13 = arith.index_cast %12 : i32 to index
    %c0_2 = arith.constant 0 : index
    %14 = vector.load %arg3[%13, %c0_2] : memref<100x32xf32, #tpu.memory_space<vmem>>, vector<1x32xf32>
    %15 = arith.index_cast %c1_i32 : i32 to index
    %c0_3 = arith.constant 0 : index
    %16 = vector.load %arg6[%15, %c0_3] : memref<8x32xf32, #tpu.memory_space<vmem>>, vector<1x32xf32>
    tpu.vector_store %arg6[%15, %c0_3], %14 {strides = array<i32>} : memref<8x32xf32, #tpu.memory_space<vmem>>, vector<1x32xf32>,
    %c2_i32 = arith.constant 2 : i32
    %17 = arith.addi %2, %c2_i32 : i32
    %18 = arith.index_cast %17 : i32 to index
    %19 = memref.load %arg2[%18] : memref<16xi32, #tpu.memory_space<smem>>
    %20 = arith.index_cast %19 : i32 to index
    %c0_4 = arith.constant 0 : index
    %21 = vector.load %arg3[%20, %c0_4] : memref<100x32xf32, #tpu.memory_space<vmem>>, vector<1x32xf32>
    %22 = arith.index_cast %c2_i32 : i32 to index
    %c0_5 = arith.constant 0 : index
    %23 = vector.load %arg6[%22, %c0_5] : memref<8x32xf32, #tpu.memory_space<vmem>>, vector<1x32xf32>
    tpu.vector_store %arg6[%22, %c0_5], %21 {strides = array<i32>} : memref<8x32xf32, #tpu.memory_space<vmem>>, vector<1x32xf32>,
    %c3_i32 = arith.constant 3 : i32
    %24 = arith.addi %2, %c3_i32 : i32
    %25 = arith.index_cast %24 : i32 to index
    %26 = memref.load %arg2[%25] : memref<16xi32, #tpu.memory_space<smem>>
    %27 = arith.index_cast %26 : i32 to index
    %c0_6 = arith.constant 0 : index
    %28 = vector.load %arg3[%27, %c0_6] : memref<100x32xf32, #tpu.memory_space<vmem>>, vector<1x32xf32>
    %29 = arith.index_cast %c3_i32 : i32 to index
    %c0_7 = arith.constant 0 : index
    %30 = vector.load %arg6[%29, %c0_7] : memref<8x32xf32, #tpu.memory_space<vmem>>, vector<1x32xf32>
    tpu.vector_store %arg6[%29, %c0_7], %28 {strides = array<i32>} : memref<8x32xf32, #tpu.memory_space<vmem>>, vector<1x32xf32>,
    %c4_i32 = arith.constant 4 : i32
    %31 = arith.addi %2, %c4_i32 : i32
    %32 = arith.index_cast %31 : i32 to index
    %33 = memref.load %arg2[%32] : memref<16xi32, #tpu.memory_space<smem>>
    %34 = arith.index_cast %33 : i32 to index
    %c0_8 = arith.constant 0 : index
    %35 = vector.load %arg3[%34, %c0_8] : memref<100x32xf32, #tpu.memory_space<vmem>>, vector<1x32xf32>
    %36 = arith.index_cast %c4_i32 : i32 to index
    %c0_9 = arith.constant 0 : index
    %37 = vector.load %arg6[%36, %c0_9] : memref<8x32xf32, #tpu.memory_space<vmem>>, vector<1x32xf32>
    tpu.vector_store %arg6[%36, %c0_9], %35 {strides = array<i32>} : memref<8x32xf32, #tpu.memory_space<vmem>>, vector<1x32xf32>,
    %c5_i32 = arith.constant 5 : i32
    %38 = arith.addi %2, %c5_i32 : i32
    %39 = arith.index_cast %38 : i32 to index
    %40 = memref.load %arg2[%39] : memref<16xi32, #tpu.memory_space<smem>>
    %41 = arith.index_cast %40 : i32 to index
    %c0_10 = arith.constant 0 : index
    %42 = vector.load %arg3[%41, %c0_10] : memref<100x32xf32, #tpu.memory_space<vmem>>, vector<1x32xf32>
    %43 = arith.index_cast %c5_i32 : i32 to index
    %c0_11 = arith.constant 0 : index
    %44 = vector.load %arg6[%43, %c0_11] : memref<8x32xf32, #tpu.memory_space<vmem>>, vector<1x32xf32>
    tpu.vector_store %arg6[%43, %c0_11], %42 {strides = array<i32>} : memref<8x32xf32, #tpu.memory_space<vmem>>, vector<1x32xf32>,
    %c6_i32 = arith.constant 6 : i32
    %45 = arith.addi %2, %c6_i32 : i32
    %46 = arith.index_cast %45 : i32 to index
    %47 = memref.load %arg2[%46] : memref<16xi32, #tpu.memory_space<smem>>
    %48 = arith.index_cast %47 : i32 to index
    %c0_12 = arith.constant 0 : index
    %49 = vector.load %arg3[%48, %c0_12] : memref<100x32xf32, #tpu.memory_space<vmem>>, vector<1x32xf32>
    %50 = arith.index_cast %c6_i32 : i32 to index
    %c0_13 = arith.constant 0 : index
    %51 = vector.load %arg6[%50, %c0_13] : memref<8x32xf32, #tpu.memory_space<vmem>>, vector<1x32xf32>
    tpu.vector_store %arg6[%50, %c0_13], %49 {strides = array<i32>} : memref<8x32xf32, #tpu.memory_space<vmem>>, vector<1x32xf32>,
    %c7_i32 = arith.constant 7 : i32
    %52 = arith.addi %2, %c7_i32 : i32
    %53 = arith.index_cast %52 : i32 to index
    %54 = memref.load %arg2[%53] : memref<16xi32, #tpu.memory_space<smem>>
    %55 = arith.index_cast %54 : i32 to index
    %c0_14 = arith.constant 0 : index
    %56 = vector.load %arg3[%55, %c0_14] : memref<100x32xf32, #tpu.memory_space<vmem>>, vector<1x32xf32>
    %57 = arith.index_cast %c7_i32 : i32 to index
    %c0_15 = arith.constant 0 : index
    %58 = vector.load %arg6[%57, %c0_15] : memref<8x32xf32, #tpu.memory_space<vmem>>, vector<1x32xf32>
    tpu.vector_store %arg6[%57, %c0_15], %56 {strides = array<i32>} : memref<8x32xf32, #tpu.memory_space<vmem>>, vector<1x32xf32>,
    %c8_i32_16 = arith.constant 8 : i32
    %c0_17 = arith.constant 0 : index
    %c0_18 = arith.constant 0 : index
    %59 = vector.load %arg6[%c0_17, %c0_18] : memref<8x32xf32, #tpu.memory_space<vmem>>, vector<8x32xf32>
    %c0_19 = arith.constant 0 : index
    %c0_20 = arith.constant 0 : index
    %60 = vector.load %arg4[%c0_19, %c0_20] : memref<8x32xf32, #tpu.memory_space<vmem>>, vector<8x32xf32>
    %61 = arith.addf %59, %60 : vector<8x32xf32>
    %c0_21 = arith.constant 0 : index
    %c0_22 = arith.constant 0 : index
    %c0_23 = arith.constant 0 : index
    %62 = vector.load %arg5[%c0_21, %c0_22, %c0_23] : memref<1x8x32xf32, #tpu.memory_space<vmem>>, vector<1x8x32xf32>
    %63 = vector.shape_cast %62 : vector<1x8x32xf32> to vector<8x32xf32>
    %64 = vector.shape_cast %61 : vector<8x32xf32> to vector<1x8x32xf32>
    tpu.vector_store %arg5[%c0_21, %c0_22, %c0_23], %64 {strides = array<i32>} : memref<1x8x32xf32, #tpu.memory_space<vmem>>, vector<1x8x32xf32>,
    return
  }
  func.func @transform_0(%arg0: i32, %arg1: i32, %arg2: memref<16xi32, #tpu.memory_space<smem>>) -> (i32, i32) {
    %c0_i32 = arith.constant 0 : i32
    %c0_i32_0 = arith.constant 0 : i32
    %c0_i32_1 = arith.constant 0 : i32
    return %c0_i32, %c0_i32_0 : i32, i32
  }
  func.func @transform_1(%arg0: i32, %arg1: i32, %arg2: memref<16xi32, #tpu.memory_space<smem>>) -> (i32, i32) {
    %c0_i32 = arith.constant 0 : i32
    %c0_i32_0 = arith.constant 0 : i32
    return %arg1, %c0_i32 : i32, i32
  }
  func.func @transform_2(%arg0: i32, %arg1: i32, %arg2: memref<16xi32, #tpu.memory_space<smem>>) -> (i32, i32, i32) {
    %c0_i32 = arith.constant 0 : i32
    %c0_i32_0 = arith.constant 0 : i32
    return %arg0, %arg1, %c0_i32 : i32, i32, i32
  }
}

</mosaic_0001>

<bundles_post_ra>
// kernel: tpu_custom_call.1
= control target key start
LH: loop header
LB: loop body
LE: loop exit
PB: predicated region body
PF: predicated region fallthrough
CT: control target
= control target key end

     0   :  { %s631_s0 = inlined_call_operand.vmem [shape: s32[16], index: 0, kind: input, shape index: {}]   ;;  %s632_s1 = inlined_call_operand.vmem [shape: f32[100,32], index: 1, kind: input, shape index: {}]   ;;  %s633_s2 = inlined_call_operand.vmem [shape: f32[512,32], index: 2, kind: input, shape index: {}]   ;;  %s634_s3 = inlined_call_operand.hbm [shape: f32[2,8,32], index: 3, kind: output, shape index: {}]  }
   0x1   :  { %s8_s14 = sshll.u32 %s631_s0, 4  ;;  %s9_s14 = int_to_ptr.vmem [resolvable:$true] %s8_s14 }
   0x2   :  { %s369_s15 = scalar_lea.vmem %s9_s14, 16  ;;  %p374_p1 = scmp.lt.s32.totalorder %s9_s14, %s9_s14 }
   0x3   :  { %p370_p0 = scmp.ne.s32.totalorder %s9_s14, %s369_s15  ;;  %p375_p2 = scmp.lt.s32.totalorder %s369_s15, %s369_s15 }
   0x5   :  { %p376_p3 = por %p375_p2, %p374_p1 }
   0x7   :  { %p377_p4 = pnand %p376_p3, %p370_p0 }
   0x9   :  { %380 = shalt.err (!%p377_p4)  }
   0xa   :  { %s463_s16 = smov [#allocation4]  }
   0xb   :  { %11 = dma.vmem_to_smem %s9_s14, 16, %s463_s16, [#allocation3] }
   0xc   :  { %433 = dma.done.wait [#allocation3], 16 }
   0xd   :  { %434 = vsyncadd [#allocation3], 4294967280 }
   0xe   :  { %13 = sfence }
   0xf   :  { %14 = vsyncpa [#allocation6], 0 }
  0x10   :  { %16 = vsyncpa [#allocation6 + $0x1], 0  ;;  %s488_s17 = smov 0   ;;  %s490_s18 = smov 0  }
  0x11   :  { %s492_s0 = smov 0   ;;  %s494_s19 = smov 0  }
  0x12   :  { %s496_s20 = smov 0   ;;  %s498_s21 = smov 0  }
  0x13 LB: > { %637 = sst [smem:[#allocation9_spill]] %s457_s20  ;;  %s302_s22 = sadd.s32 4294967295, %s461_s21   ;;  %s461_s21 = sphi %s498_s21, %s22_s21   ;;  %s457_s20 = sphi %s496_s20, %s642_s20   ;;  %s453_s19 = sphi %s494_s19, %s641_s19   ;;  %s449_s0 = sphi %s492_s0, %s645_s0   ;;  %s445_s18 = sphi %s490_s18, %s644_s18   ;;  %s441_s17 = sphi %s488_s17, %s643_s17  }
  0x14   : > { %s303_s23 = sadd.s32 4294967294, %s461_s21   ;;  %s34_s24 = sadd.s32 1, %s457_s20 }
  0x15   : > { %s90_s25 = sadd.s32 1, %s449_s0  ;;  %p36_p5 = scmp.ge.s32.totalorder %s34_s24, 2 }
  0x16   : > { %p100_p6 = scmp.ne.s32.totalorder %s449_s0, %s445_s18  ;;  %p101_p7 = scmp.eq.s32.totalorder %s302_s22, 1 }
  0x17   : > { %p106_p8 = scmp.ne.s32.totalorder %s445_s18, %s441_s17  ;;  %s647_s24 = smov (%p36_p5, %s34_s24), 0 }
  0x18   : > { %638 = sst [smem:[#allocation10_spill]] %s647_s24  ;;  %p528_p9 = por %p101_p7, %p100_p6 }
  0x19   : > { %p107_p10 = scmp.eq.s32.totalorder %s303_s23, 1  ;;  %s85_s27 = ssub.s32 %s457_s20, %s647_s24 }
  0x1a   : > { %p306_p11 = scmp.ge.s32.totalorder %s461_s21, 1  ;;  %p88_p12 = scmp.eq.s32.totalorder %s85_s27, 0 }
  0x1b   : > { %p535_p13 = por %p107_p10, %p106_p8  ;;  %p135_p0 = scmp.lt.s32.totalorder %s461_s21, 3 }
  0x1c   : > { %s541_s29 = scalar_select %p88_p12, %s449_s0, %s90_s25  }
  0x1d   : > { %p136_p1 = pnand %p306_p11, %p135_p0 }
  0x1e   : > { %s308_s30 = sshll.u32 (!%p136_p1), %s453_s19, 3  ;;  %vm166_vm0 = vcmask (!%p136_p1), 253952   ;;  %s153_s27 = sand.u32 (!%p136_p1), 1, %s445_s18   ;;  %v204_v8 = vld [vmem:[%s633_s2] sm:$0xff] (!%p136_p1)  ;;  %vm206_vm1 = vcmask (!%p136_p1), 261120  }
  0x1f   : > { %139 = sbr.rel (%p136_p1) target bundleno = 71 (0x47), region = 28  ;;  %s163_s4 = sld [smem:[#allocation4 + %s308_s30]] (!%p136_p1) }
  0x20   : > { %s168_s5 = sadd.s32 (!%p136_p1), 1, %s308_s30  ;;  %s173_s7 = sadd.s32 (!%p136_p1), 2, %s308_s30 }
  0x21   : > { %s169_s6 = sld [smem:[#allocation4 + %s168_s5]] (!%p136_p1)  ;;  %s178_s9 = sadd.s32 (!%p136_p1), 3, %s308_s30 }
  0x22   : > { %s174_s8 = sld [smem:[#allocation4 + %s173_s7]] (!%p136_p1)  ;;  %s183_s11 = sadd.s32 (!%p136_p1), 4, %s308_s30 }
  0x23   : > { %s179_s10 = sld [smem:[#allocation4 + %s178_s9]] (!%p136_p1)  ;;  %s188_s13 = sadd.s32 (!%p136_p1), 5, %s308_s30 }
  0x24   : > { %s184_s12 = sld [smem:[#allocation4 + %s183_s11]] (!%p136_p1)  ;;  %s193_s15 = sadd.s32 (!%p136_p1), 6, %s308_s30 }
  0x25   : > { %s189_s14 = sld [smem:[#allocation4 + %s188_s13]] (!%p136_p1)  ;;  %s164_s23 = scalar_lea.vmem (!%p136_p1), %s632_s1, %s163_s4 }
  0x26   : > { %s194_s25 = sld [smem:[#allocation4 + %s193_s15]]  ;;  %v165_v0 = vld [vmem:[%s164_s23] sm:$0x1]  ;;  %s198_s7 = sadd.s32 7, %s308_s30 }
  0x27   : > { %s170_s5 = scalar_lea.vmem %s632_s1, %s169_s6  ;;  %167 = vst.msk [vmem:[#allocation2] sm:$0x1] %vm166_vm0, %v165_v0  ;;  %s199_s20 = sld [smem:[#allocation4 + %s198_s7]] }
  0x28   : > { %v171_v1 = vld [vmem:[%s170_s5] sm:$0x1]  ;;  %s175_s13 = scalar_lea.vmem %s632_s1, %s174_s8 }
  0x29   : > { %172 = vst.msk [vmem:[#allocation2 + $0x1] sm:$0x1] %vm166_vm0, %v171_v1  ;;  %v176_v2 = vld [vmem:[%s175_s13] sm:$0x1]  ;;  %s180_s16 = scalar_lea.vmem %s632_s1, %s179_s10  ;;  %s307_s13 = sshll.u32 %s153_s27, 3 }
  0x2a   : > { %177 = vst.msk [vmem:[#allocation2 + $0x2] sm:$0x1] %vm166_vm0, %v176_v2  ;;  %v181_v3 = vld [vmem:[%s180_s16] sm:$0x1]  ;;  %s185_s6 = scalar_lea.vmem %s632_s1, %s184_s12 }
  0x2b   : > { %182 = vst.msk [vmem:[#allocation2 + $0x3] sm:$0x1] %vm166_vm0, %v181_v3  ;;  %v186_v4 = vld [vmem:[%s185_s6] sm:$0x1]  ;;  %s190_s23 = scalar_lea.vmem %s632_s1, %s189_s14  ;;  %s155_s14 = scalar_lea.vmem [#allocation5], %s307_s13 }
  0x2c   : > { %187 = vst.msk [vmem:[#allocation2 + $0x4] sm:$0x1] %vm166_vm0, %v186_v4  ;;  %v191_v5 = vld [vmem:[%s190_s23] sm:$0x1]  ;;  %s195_s7 = scalar_lea.vmem %s632_s1, %s194_s25  ;;  %s223_s4 = sshll.u32 %s155_s14, 4  ;;  %s581_s4 = int_to_ptr.vmem [resolvable:$true] %s223_s4 }
  0x2d   : > { %192 = vst.msk [vmem:[#allocation2 + $0x5] sm:$0x1] %vm166_vm0, %v191_v5  ;;  %v196_v6 = vld [vmem:[%s195_s7] sm:$0x1]  ;;  %s200_s11 = scalar_lea.vmem %s632_s1, %s199_s20  ;;  %s310_s25 = sshll.u32 %s453_s19, 7 }
  0x2e   : > { %197 = vst.msk [vmem:[#allocation2 + $0x6] sm:$0x1] %vm166_vm0, %v196_v6  ;;  %v201_v7 = vld [vmem:[%s200_s11] sm:$0x1]  ;;  %s586_s30 = scalar_lea.hbm %s634_s3, %s310_s25  ;;  %s209_s6 = scalar_lea.sflag [#allocation6], %s153_s27 }
  0x2f   : > { %202 = vst.msk [vmem:[#allocation2 + $0x7] sm:$0x1] %vm166_vm0, %v201_v7  ;;  %s381_s22 = scalar_lea.vmem %s581_s4, 128  ;;  %s464_s19 = smov [#allocation5]  }
  0x30   : > { %p382_p2 = scmp.ne.s32.totalorder %s581_s4, %s381_s22  ;;  %s385_s8 = sshll.u32 %s464_s19, 4  ;;  %s386_s8 = int_to_ptr.vmem [resolvable:$false] %s385_s8 }
  0x31   : > { %s387_s23 = scalar_lea.vmem %s386_s8, 256  ;;  %p388_p5 = scmp.lt.s32.totalorder %s581_s4, %s386_s8 }
  0x32   : > { %p383_p3 = pnand %p382_p2, %p528_p9  ;;  %p389_p6 = scmp.lt.s32.totalorder %s387_s23, %s381_s22 }
  0x34   : > { %p384_p4 = pneg %p383_p3  ;;  %p390_p7 = por %p389_p6, %p388_p5 }
  0x36   : > { %v203_v9 = vld [vmem:[#allocation2] sm:$0xff]  ;;  %p391_p8 = pnand %p390_p7, %p384_p4 }
  0x37   : > { %v205_v10 = vadd.f32 %v204_v8, %v203_v9 }
  0x39   : > { %207 = vst.msk [vmem:[%s155_s14] sm:$0xff] %vm206_vm1, %v205_v10 }
  0x3a   : > { %394 = shalt.err (!%p391_p8)
}
  0x3b   : > { %s395_s27 = scalar_lea.hbm %s586_s30, 128  ;;  %s399_s7 = scalar_lea.hbm %s634_s3, 256 }
  0x3c   : > { %p396_p10 = scmp.ne.s32.totalorder %s586_s30, %s395_s27  ;;  %p400_p0 = scmp.lt.u32.totalorder %s586_s30, %s634_s3 }
  0x3d   : > { %p401_p1 = scmp.lt.u32.totalorder %s399_s7, %s395_s27  ;;  %p403_p3 = scmp.lt.u32.totalorder %s395_s27, %s586_s30 }
  0x3e   : > { %p397_p11 = pnand %p396_p10, %p528_p9 }
  0x3f   : > { %p402_p2 = por %p401_p1, %p400_p0 }
  0x40   : > { %p398_p12 = pneg %p397_p11 }
  0x41   : > { %p404_p4 = por %p403_p3, %p402_p2 }
  0x43   : > { %p405_p5 = pnand %p404_p4, %p398_p12 }
  0x45   : > { %408 = shalt.err (!%p405_p5)
}
  0x46   : > { %313 = dma.vmem_to_hbm [thread:$0]  (%p528_p9), %s581_s4, 128, %s586_s30, %s209_s6  }
  0x47 PF: > { %p319_p6 = scmp.ge.s32.totalorder %s461_s21, 2  ;;  %s235_s11 = sand.u32 1, %s441_s17  }
  0x48   : > { %s236_s13 = scalar_lea.sflag [#allocation6], %s235_s11 }
  0x49   : > { %p316_p7 = pnand %p319_p6, %p535_p13 }
  0x4b   : > { %436 = dma.done.wait (!%p316_p7), %s236_s13, 128  }
  0x4c   : > { %438 = vsyncadd (!%p316_p7), %s236_s13, 4294967168  ;;  %s22_s21 = sadd.s32 1, %s461_s21   ;;  %s641_s19 = sld [smem:[#allocation9_spill]] }
  0x4d   : > { %p19_p8 = scmp.ge.s32.totalorder %s22_s21, 4   ;;  %s642_s20 = sld [smem:[#allocation10_spill]] }
  0x4e   : > { %s643_s17 = smov %s445_s18  ;;  %s644_s18 = smov %s449_s0 }
  0x4f   : > { %s645_s0 = smov %s541_s29  ;;  %21 = sbr.rel (!%p19_p8) target bundleno = 19 (0x13), region = 71 }
  0x56   :  { %241 = vsyncpa [#allocation6], 1 }
  0x57   :  { %243 = vsyncpa [#allocation6 + $0x1], 1 }

</bundles_post_ra>
